<compile_context>
chip_gen: v7x
topology: tpu7x:2x2x1
jax: 0.10.0
libtpu: 0.0.40
codegen_flags: <defaults>
</compile_context>

<pallas_src>
import numpy as np
import jax
import jax.numpy as jnp
from jax.experimental import pallas as pl
from jax.experimental.pallas import tpu as pltpu


def _round_up(v, m):
    return ((v + m - 1) // m) * m


def _make_kernel(H, W, HW, OFF, PADL, CI, CO):
    """Builds the Residual_G kernel for fixed static shapes."""

    def kernel(x_ref, mask_ref, w1_ref, b1_ref, w2_ref, b2_ref,
               wsc_ref, bsc_ref, out_ref, xpad_ref, hpad_ref):
        cdt = xpad_ref.dtype

        # Zero the halo pad blocks of both flat scratches (cheap aligned
        # stores, done every step so the kernel stays correct when the
        # parallel batch axis is split across TensorCores).
        xpad_ref[:, 0:OFF] = jnp.zeros((CI, OFF), cdt)
        xpad_ref[:, OFF + HW:PADL] = jnp.zeros((CI, PADL - OFF - HW), cdt)
        hpad_ref[:, 0:OFF] = jnp.zeros((CO, OFF), cdt)
        hpad_ref[:, OFF + HW:PADL] = jnp.zeros((CO, PADL - OFF - HW), cdt)

        # relu(x) into the interior of the row-padded flat scratch.
        # OFF is a multiple of 128 -> lane-aligned unmasked stores.
        xpad_ref[:, OFF:OFF + HW] = jnp.maximum(x_ref[0], 0).astype(cdt)

        # Column-validity masks (0/1) for the W-direction taps.
        m_left = mask_ref[0:1, :]    # valid source for dw = -1   (1, HW)
        m_right = mask_ref[1:2, :]   # valid source for dw = +1   (1, HW)

        def conv3x3(pad_ref, w_ref):
            """Tap-accumulated 3x3 'same' conv -> (CO, HW) f32."""
            acc = None
            for kh in range(3):
                for kw in range(3):
                    dw = kw - 1
                    start = OFF + (kh - 1) * W + dw
                    slab = pad_ref[:, start:start + HW]        # (cin, HW)
                    if dw == -1:
                        slab = slab * m_left
                    elif dw == 1:
                        slab = slab * m_right
                    part = jnp.dot(w_ref[kh * 3 + kw], slab,
                                   preferred_element_type=jnp.float32)
                    acc = part if acc is None else acc + part
            return acc

        # conv1 -> bias -> relu -> interior of the second padded scratch.
        h = jnp.maximum(conv3x3(xpad_ref, w1_ref) + b1_ref[...], 0.0)
        hpad_ref[:, OFF:OFF + HW] = h.astype(cdt)

        # conv2 -> bias.
        y = conv3x3(hpad_ref, w2_ref) + b2_ref[...]

        # 1x1 shortcut on the pre-ReLU input, computed last so its live
        # range does not span the conv section (no spill traffic).
        sc = jnp.dot(wsc_ref[...], x_ref[0],
                     preferred_element_type=jnp.float32) + bsc_ref[...]

        out_ref[0] = (y + sc).astype(out_ref.dtype)

    return kernel


def residual_g_forward(x_nchw, params):
    """params = (w1_oihw, b1, w2_oihw, b2, wsc_oihw, bsc) in PyTorch layouts."""
    w1, b1, w2, b2, wsc, bsc = params
    N, Cin, H, W = x_nchw.shape
    Cout = w1.shape[0]
    HW = H * W
    cdt = x_nchw.dtype

    # Channels padded only to the sublane granule (8 for 4-byte dtypes).
    gran = 8 if jnp.dtype(cdt).itemsize == 4 else 16
    CI = _round_up(Cin, gran)
    CO = _round_up(Cout, gran)

    # Flat, H-padded scratch layout: image row r / col c lives at flat index
    # OFF + r*W + c; OFF is lane-aligned and leaves >= W+1 zero elements of
    # headroom on both sides for the 9 tap shifts.
    OFF = _round_up(W + 1, 128)
    PADL = _round_up(OFF + HW + W + 1, 128)

    # NCHW -> (N, C, H*W): pure reshape; spatial ends up lane-dense.
    x_flat = x_nchw.reshape(N, Cin, HW)
    if CI != Cin:
        x_flat = jnp.pad(x_flat, ((0, 0), (0, CI - Cin), (0, 0)))
    x_flat = x_flat.astype(cdt)

    # 0/1 lane masks marking valid source columns for dw = -1 / +1 taps.
    col = np.arange(HW, dtype=np.int64) % W
    masks = jnp.asarray(
        np.stack([(col >= 1), (col <= W - 2)]).astype(np.float32)).astype(cdt)

    # OIHW -> (9, Co_p, Ci_p): one (Co, Ci) tap matrix per (kh, kw).
    def prep3x3(w_oihw, ci_p, co_p):
        co, ci, kh, kw = w_oihw.shape
        w = jnp.transpose(w_oihw, (2, 3, 0, 1)).reshape(kh * kw, co, ci)
        return jnp.pad(w, ((0, 0), (0, co_p - co), (0, ci_p - ci))).astype(cdt)

    w1p = prep3x3(w1, CI, CO)                               # (9, CO, CI)
    w2p = prep3x3(w2, CO, CO)                               # (9, CO, CO)
    wscp = jnp.pad(wsc[:, :, 0, 0],
                   ((0, CO - Cout), (0, CI - Cin))).astype(cdt)   # (CO, CI)

    def prep_b(b):
        return jnp.pad(b, (0, CO - Cout)).reshape(CO, 1).astype(jnp.float32)

    b1p, b2p, bscp = prep_b(b1), prep_b(b2), prep_b(bsc)

    kernel = _make_kernel(H, W, HW, OFF, PADL, CI, CO)

    out = pl.pallas_call(
        kernel,
        out_shape=jax.ShapeDtypeStruct((N, CO, HW), x_nchw.dtype),
        grid_spec=pltpu.PrefetchScalarGridSpec(
            num_scalar_prefetch=0,
            grid=(N,),
            in_specs=[
                pl.BlockSpec((1, CI, HW), lambda n: (n, 0, 0)),   # x
                pl.BlockSpec((2, HW), lambda n: (0, 0)),          # col masks
                pl.BlockSpec((9, CO, CI), lambda n: (0, 0, 0)),   # w1 taps
                pl.BlockSpec((CO, 1), lambda n: (0, 0)),          # b1
                pl.BlockSpec((9, CO, CO), lambda n: (0, 0, 0)),   # w2 taps
                pl.BlockSpec((CO, 1), lambda n: (0, 0)),          # b2
                pl.BlockSpec((CO, CI), lambda n: (0, 0)),         # wsc
                pl.BlockSpec((CO, 1), lambda n: (0, 0)),          # bsc
            ],
            out_specs=pl.BlockSpec((1, CO, HW), lambda n: (n, 0, 0)),
            scratch_shapes=[
                pltpu.VMEM((CI, PADL), cdt),   # row-padded relu(x)
                pltpu.VMEM((CO, PADL), cdt),   # row-padded relu(conv1)
            ],
        ),
        compiler_params=pltpu.CompilerParams(
            dimension_semantics=("parallel",)),
    )(x_flat, masks, w1p, b1p, w2p, b2p, wscp, bscp)

    if CO != Cout:
        out = out[:, :Cout, :]
    # (N, Cout, H*W) is row-major identical to NCHW -> free reshape.
    return out.reshape(N, Cout, H, W)


def torch_reference(x, w1_oihw, b1, w2_oihw, b2, wsc_oihw, bsc):
    """Pure-JAX NCHW reference mirroring the PyTorch forward."""
    def conv(v, w, b, pad):
        y = jax.lax.conv_general_dilated(
            v, w, window_strides=(1, 1), padding=[(pad, pad), (pad, pad)],
            dimension_numbers=('NCHW', 'OIHW', 'NCHW'),
            precision=jax.lax.Precision.HIGHEST)
        return y + b[None, :, None, None]
    h = jnp.maximum(x, 0.0)
    h = conv(h, w1_oihw, b1, 1)
    h = jnp.maximum(h, 0.0)
    h = conv(h, w2_oihw, b2, 1)
    sc = conv(x, wsc_oihw, bsc, 0)
    return h + sc


if __name__ == "__main__":
    N, Cin, H, W, Cout = 2, 4, 16, 16, 8
    key = jax.random.PRNGKey(0)
    ks = jax.random.split(key, 7)

    x = jax.random.normal(ks[0], (N, Cin, H, W), jnp.float32)

    # Conv weights: normal(std=0.02) as in the module; biases: PyTorch default
    # Conv2d bias init uniform(-1/sqrt(fan_in), 1/sqrt(fan_in)).
    w1_oihw = 0.02 * jax.random.normal(ks[1], (Cout, Cin, 3, 3), jnp.float32)
    b1 = jax.random.uniform(ks[2], (Cout,), jnp.float32, -1.0, 1.0) / jnp.sqrt(Cin * 9.0)
    w2_oihw = 0.02 * jax.random.normal(ks[3], (Cout, Cout, 3, 3), jnp.float32)
    b2 = jax.random.uniform(ks[4], (Cout,), jnp.float32, -1.0, 1.0) / jnp.sqrt(Cout * 9.0)
    wsc_oihw = 0.02 * jax.random.normal(ks[5], (Cout, Cin, 1, 1), jnp.float32)
    bsc = jax.random.uniform(ks[6], (Cout,), jnp.float32, -1.0, 1.0) / jnp.sqrt(Cin * 1.0)

    params = (w1_oihw, b1, w2_oihw, b2, wsc_oihw, bsc)

    out = residual_g_forward(x, params)
    out = jax.block_until_ready(out)

    ref = torch_reference(x, w1_oihw, b1, w2_oihw, b2, wsc_oihw, bsc)
    assert out.shape == (N, Cout, H, W), out.shape
    err = float(jnp.max(jnp.abs(out - ref)))
    assert jnp.allclose(out, ref, atol=3e-3, rtol=3e-3), f"max abs err {err}"

    print("KERNEL_OK")
</pallas_src>

<mosaic_0001>
module attributes {stable_mosaic.version = 11 : i64} {
  func.func @kernel(%arg0: i32, %arg1: memref<1x8x256xf32, #tpu.memory_space<vmem>>, %arg2: memref<2x256xf32, #tpu.memory_space<vmem>>, %arg3: memref<9x8x8xf32, #tpu.memory_space<vmem>>, %arg4: memref<8x1xf32, #tpu.memory_space<vmem>>, %arg5: memref<9x8x8xf32, #tpu.memory_space<vmem>>, %arg6: memref<8x1xf32, #tpu.memory_space<vmem>>, %arg7: memref<8x8xf32, #tpu.memory_space<vmem>>, %arg8: memref<8x1xf32, #tpu.memory_space<vmem>>, %arg9: memref<1x8x256xf32, #tpu.memory_space<vmem>>, %arg10: memref<8x512xf32, #tpu.memory_space<vmem>>, %arg11: memref<8x512xf32, #tpu.memory_space<vmem>>) attributes {dimension_semantics = [#tpu.dimension_semantics<parallel>], iteration_bounds = array<i64: 2>, scalar_prefetch = 0 : i64, scratch_operands = 2 : i64, tpu.core_type = #tpu.core_type<tc>, window_params = [{transform_indices = @transform_0, window_bounds = array<i64: 1, 8, 256>}, {pipeline_mode = #tpu.pipeline_mode<synchronous>, transform_indices = @transform_1, window_bounds = array<i64: 2, 256>}, {pipeline_mode = #tpu.pipeline_mode<synchronous>, transform_indices = @transform_2, window_bounds = array<i64: 9, 8, 8>}, {pipeline_mode = #tpu.pipeline_mode<synchronous>, transform_indices = @transform_3, window_bounds = array<i64: 8, 1>}, {pipeline_mode = #tpu.pipeline_mode<synchronous>, transform_indices = @transform_4, window_bounds = array<i64: 9, 8, 8>}, {pipeline_mode = #tpu.pipeline_mode<synchronous>, transform_indices = @transform_5, window_bounds = array<i64: 8, 1>}, {pipeline_mode = #tpu.pipeline_mode<synchronous>, transform_indices = @transform_6, window_bounds = array<i64: 8, 8>}, {pipeline_mode = #tpu.pipeline_mode<synchronous>, transform_indices = @transform_7, window_bounds = array<i64: 8, 1>}, {transform_indices = @transform_8, window_bounds = array<i64: 1, 8, 256>}]} {
    %cst = arith.constant 0.000000e+00 : f32
    %0 = vector.broadcast %cst : f32 to vector<8x128xf32>
    %c0 = arith.constant 0 : index
    %c0_0 = arith.constant 0 : index
    %1 = vector.load %arg10[%c0, %c0_0] : memref<8x512xf32, #tpu.memory_space<vmem>>, vector<8x128xf32>
    tpu.vector_store %arg10[%c0, %c0_0], %0 {strides = array<i32>} : memref<8x512xf32, #tpu.memory_space<vmem>>, vector<8x128xf32>,
    %cst_1 = arith.constant 0.000000e+00 : f32
    %2 = vector.broadcast %cst_1 : f32 to vector<8x128xf32>
    %c0_2 = arith.constant 0 : index
    %c384 = arith.constant 384 : index
    %3 = vector.load %arg10[%c0_2, %c384] : memref<8x512xf32, #tpu.memory_space<vmem>>, vector<8x128xf32>
    tpu.vector_store %arg10[%c0_2, %c384], %2 {strides = array<i32>} : memref<8x512xf32, #tpu.memory_space<vmem>>, vector<8x128xf32>,
    %cst_3 = arith.constant 0.000000e+00 : f32
    %4 = vector.broadcast %cst_3 : f32 to vector<8x128xf32>
    %c0_4 = arith.constant 0 : index
    %c0_5 = arith.constant 0 : index
    %5 = vector.load %arg11[%c0_4, %c0_5] : memref<8x512xf32, #tpu.memory_space<vmem>>, vector<8x128xf32>
    tpu.vector_store %arg11[%c0_4, %c0_5], %4 {strides = array<i32>} : memref<8x512xf32, #tpu.memory_space<vmem>>, vector<8x128xf32>,
    %cst_6 = arith.constant 0.000000e+00 : f32
    %6 = vector.broadcast %cst_6 : f32 to vector<8x128xf32>
    %c0_7 = arith.constant 0 : index
    %c384_8 = arith.constant 384 : index
    %7 = vector.load %arg11[%c0_7, %c384_8] : memref<8x512xf32, #tpu.memory_space<vmem>>, vector<8x128xf32>
    tpu.vector_store %arg11[%c0_7, %c384_8], %6 {strides = array<i32>} : memref<8x512xf32, #tpu.memory_space<vmem>>, vector<8x128xf32>,
    %c0_9 = arith.constant 0 : index
    %c0_10 = arith.constant 0 : index
    %c0_11 = arith.constant 0 : index
    %8 = vector.load %arg1[%c0_9, %c0_10, %c0_11] : memref<1x8x256xf32, #tpu.memory_space<vmem>>, vector<1x8x256xf32>
    %9 = vector.shape_cast %8 : vector<1x8x256xf32> to vector<8x256xf32>
    %cst_12 = arith.constant 0.000000e+00 : f32
    %10 = vector.broadcast %cst_12 : f32 to vector<8x256xf32>
    %11 = arith.maximumf %9, %10 : vector<8x256xf32>
    %c0_13 = arith.constant 0 : index
    %c128 = arith.constant 128 : index
    %12 = vector.load %arg10[%c0_13, %c128] : memref<8x512xf32, #tpu.memory_space<vmem>>, vector<8x256xf32>
    tpu.vector_store %arg10[%c0_13, %c128], %11 {strides = array<i32>} : memref<8x512xf32, #tpu.memory_space<vmem>>, vector<8x256xf32>,
    %c0_14 = arith.constant 0 : index
    %c0_15 = arith.constant 0 : index
    %13 = vector.load %arg2[%c0_14, %c0_15] : memref<2x256xf32, #tpu.memory_space<vmem>>, vector<1x256xf32>
    %c1 = arith.constant 1 : index
    %c0_16 = arith.constant 0 : index
    %14 = vector.load %arg2[%c1, %c0_16] : memref<2x256xf32, #tpu.memory_space<vmem>>, vector<1x256xf32>
    %c0_17 = arith.constant 0 : index
    %c111 = arith.constant 111 : index
    %15 = vector.load %arg10[%c0_17, %c111] : memref<8x512xf32, #tpu.memory_space<vmem>>, vector<8x256xf32>
    %16 = vector.broadcast %13 : vector<1x256xf32> to vector<8x256xf32>
    %17 = arith.mulf %15, %16 : vector<8x256xf32>
    %c0_18 = arith.constant 0 : index
    %c0_19 = arith.constant 0 : index
    %c0_20 = arith.constant 0 : index
    %18 = vector.load %arg3[%c0_18, %c0_19, %c0_20] : memref<9x8x8xf32, #tpu.memory_space<vmem>>, vector<1x8x8xf32>
    %19 = vector.shape_cast %18 : vector<1x8x8xf32> to vector<8x8xf32>
    %cst_21 = arith.constant dense<0.000000e+00> : vector<8x256xf32>
    %20 = tpu.matmul %19, %17, %cst_21 {dimension_numbers = #tpu.dot_dimension_numbers<[1], [0], [0], [1], [0, 0, 1, 1], [], []>} : vector<8x8xf32>, vector<8x256xf32>, vector<8x256xf32> -> vector<8x256xf32>
    %c0_22 = arith.constant 0 : index
    %c112 = arith.constant 112 : index
    %21 = vector.load %arg10[%c0_22, %c112] : memref<8x512xf32, #tpu.memory_space<vmem>>, vector<8x256xf32>
    %c1_23 = arith.constant 1 : index
    %c0_24 = arith.constant 0 : index
    %c0_25 = arith.constant 0 : index
    %22 = vector.load %arg3[%c1_23, %c0_24, %c0_25] : memref<9x8x8xf32, #tpu.memory_space<vmem>>, vector<1x8x8xf32>
    %23 = vector.shape_cast %22 : vector<1x8x8xf32> to vector<8x8xf32>
    %cst_26 = arith.constant dense<0.000000e+00> : vector<8x256xf32>
    %24 = tpu.matmul %23, %21, %cst_26 {dimension_numbers = #tpu.dot_dimension_numbers<[1], [0], [0], [1], [0, 0, 1, 1], [], []>} : vector<8x8xf32>, vector<8x256xf32>, vector<8x256xf32> -> vector<8x256xf32>
    %25 = arith.addf %20, %24 : vector<8x256xf32>
    %c0_27 = arith.constant 0 : index
    %c113 = arith.constant 113 : index
    %26 = vector.load %arg10[%c0_27, %c113] : memref<8x512xf32, #tpu.memory_space<vmem>>, vector<8x256xf32>
    %27 = vector.broadcast %14 : vector<1x256xf32> to vector<8x256xf32>
    %28 = arith.mulf %26, %27 : vector<8x256xf32>
    %c2 = arith.constant 2 : index
    %c0_28 = arith.constant 0 : index
    %c0_29 = arith.constant 0 : index
    %29 = vector.load %arg3[%c2, %c0_28, %c0_29] : memref<9x8x8xf32, #tpu.memory_space<vmem>>, vector<1x8x8xf32>
    %30 = vector.shape_cast %29 : vector<1x8x8xf32> to vector<8x8xf32>
    %cst_30 = arith.constant dense<0.000000e+00> : vector<8x256xf32>
    %31 = tpu.matmul %30, %28, %cst_30 {dimension_numbers = #tpu.dot_dimension_numbers<[1], [0], [0], [1], [0, 0, 1, 1], [], []>} : vector<8x8xf32>, vector<8x256xf32>, vector<8x256xf32> -> vector<8x256xf32>
    %32 = arith.addf %25, %31 : vector<8x256xf32>
    %c0_31 = arith.constant 0 : index
    %c127 = arith.constant 127 : index
    %33 = vector.load %arg10[%c0_31, %c127] : memref<8x512xf32, #tpu.memory_space<vmem>>, vector<8x256xf32>
    %34 = vector.broadcast %13 : vector<1x256xf32> to vector<8x256xf32>
    %35 = arith.mulf %33, %34 : vector<8x256xf32>
    %c3 = arith.constant 3 : index
    %c0_32 = arith.constant 0 : index
    %c0_33 = arith.constant 0 : index
    %36 = vector.load %arg3[%c3, %c0_32, %c0_33] : memref<9x8x8xf32, #tpu.memory_space<vmem>>, vector<1x8x8xf32>
    %37 = vector.shape_cast %36 : vector<1x8x8xf32> to vector<8x8xf32>
    %cst_34 = arith.constant dense<0.000000e+00> : vector<8x256xf32>
    %38 = tpu.matmul %37, %35, %cst_34 {dimension_numbers = #tpu.dot_dimension_numbers<[1], [0], [0], [1], [0, 0, 1, 1], [], []>} : vector<8x8xf32>, vector<8x256xf32>, vector<8x256xf32> -> vector<8x256xf32>
    %39 = arith.addf %32, %38 : vector<8x256xf32>
    %c0_35 = arith.constant 0 : index
    %c128_36 = arith.constant 128 : index
    %40 = vector.load %arg10[%c0_35, %c128_36] : memref<8x512xf32, #tpu.memory_space<vmem>>, vector<8x256xf32>
    %c4 = arith.constant 4 : index
    %c0_37 = arith.constant 0 : index
    %c0_38 = arith.constant 0 : index
    %41 = vector.load %arg3[%c4, %c0_37, %c0_38] : memref<9x8x8xf32, #tpu.memory_space<vmem>>, vector<1x8x8xf32>
    %42 = vector.shape_cast %41 : vector<1x8x8xf32> to vector<8x8xf32>
    %cst_39 = arith.constant dense<0.000000e+00> : vector<8x256xf32>
    %43 = tpu.matmul %42, %40, %cst_39 {dimension_numbers = #tpu.dot_dimension_numbers<[1], [0], [0], [1], [0, 0, 1, 1], [], []>} : vector<8x8xf32>, vector<8x256xf32>, vector<8x256xf32> -> vector<8x256xf32>
    %44 = arith.addf %39, %43 : vector<8x256xf32>
    %c0_40 = arith.constant 0 : index
    %c129 = arith.constant 129 : index
    %45 = vector.load %arg10[%c0_40, %c129] : memref<8x512xf32, #tpu.memory_space<vmem>>, vector<8x256xf32>
    %46 = vector.broadcast %14 : vector<1x256xf32> to vector<8x256xf32>
    %47 = arith.mulf %45, %46 : vector<8x256xf32>
    %c5 = arith.constant 5 : index
    %c0_41 = arith.constant 0 : index
    %c0_42 = arith.constant 0 : index
    %48 = vector.load %arg3[%c5, %c0_41, %c0_42] : memref<9x8x8xf32, #tpu.memory_space<vmem>>, vector<1x8x8xf32>
    %49 = vector.shape_cast %48 : vector<1x8x8xf32> to vector<8x8xf32>
    %cst_43 = arith.constant dense<0.000000e+00> : vector<8x256xf32>
    %50 = tpu.matmul %49, %47, %cst_43 {dimension_numbers = #tpu.dot_dimension_numbers<[1], [0], [0], [1], [0, 0, 1, 1], [], []>} : vector<8x8xf32>, vector<8x256xf32>, vector<8x256xf32> -> vector<8x256xf32>
    %51 = arith.addf %44, %50 : vector<8x256xf32>
    %c0_44 = arith.constant 0 : index
    %c143 = arith.constant 143 : index
    %52 = vector.load %arg10[%c0_44, %c143] : memref<8x512xf32, #tpu.memory_space<vmem>>, vector<8x256xf32>
    %53 = vector.broadcast %13 : vector<1x256xf32> to vector<8x256xf32>
    %54 = arith.mulf %52, %53 : vector<8x256xf32>
    %c6 = arith.constant 6 : index
    %c0_45 = arith.constant 0 : index
    %c0_46 = arith.constant 0 : index
    %55 = vector.load %arg3[%c6, %c0_45, %c0_46] : memref<9x8x8xf32, #tpu.memory_space<vmem>>, vector<1x8x8xf32>
    %56 = vector.shape_cast %55 : vector<1x8x8xf32> to vector<8x8xf32>
    %cst_47 = arith.constant dense<0.000000e+00> : vector<8x256xf32>
    %57 = tpu.matmul %56, %54, %cst_47 {dimension_numbers = #tpu.dot_dimension_numbers<[1], [0], [0], [1], [0, 0, 1, 1], [], []>} : vector<8x8xf32>, vector<8x256xf32>, vector<8x256xf32> -> vector<8x256xf32>
    %58 = arith.addf %51, %57 : vector<8x256xf32>
    %c0_48 = arith.constant 0 : index
    %c144 = arith.constant 144 : index
    %59 = vector.load %arg10[%c0_48, %c144] : memref<8x512xf32, #tpu.memory_space<vmem>>, vector<8x256xf32>
    %c7 = arith.constant 7 : index
    %c0_49 = arith.constant 0 : index
    %c0_50 = arith.constant 0 : index
    %60 = vector.load %arg3[%c7, %c0_49, %c0_50] : memref<9x8x8xf32, #tpu.memory_space<vmem>>, vector<1x8x8xf32>
    %61 = vector.shape_cast %60 : vector<1x8x8xf32> to vector<8x8xf32>
    %cst_51 = arith.constant dense<0.000000e+00> : vector<8x256xf32>
    %62 = tpu.matmul %61, %59, %cst_51 {dimension_numbers = #tpu.dot_dimension_numbers<[1], [0], [0], [1], [0, 0, 1, 1], [], []>} : vector<8x8xf32>, vector<8x256xf32>, vector<8x256xf32> -> vector<8x256xf32>
    %63 = arith.addf %58, %62 : vector<8x256xf32>
    %c0_52 = arith.constant 0 : index
    %c145 = arith.constant 145 : index
    %64 = vector.load %arg10[%c0_52, %c145] : memref<8x512xf32, #tpu.memory_space<vmem>>, vector<8x256xf32>
    %65 = vector.broadcast %14 : vector<1x256xf32> to vector<8x256xf32>
    %66 = arith.mulf %64, %65 : vector<8x256xf32>
    %c8 = arith.constant 8 : index
    %c0_53 = arith.constant 0 : index
    %c0_54 = arith.constant 0 : index
    %67 = vector.load %arg3[%c8, %c0_53, %c0_54] : memref<9x8x8xf32, #tpu.memory_space<vmem>>, vector<1x8x8xf32>
    %68 = vector.shape_cast %67 : vector<1x8x8xf32> to vector<8x8xf32>
    %cst_55 = arith.constant dense<0.000000e+00> : vector<8x256xf32>
    %69 = tpu.matmul %68, %66, %cst_55 {dimension_numbers = #tpu.dot_dimension_numbers<[1], [0], [0], [1], [0, 0, 1, 1], [], []>} : vector<8x8xf32>, vector<8x256xf32>, vector<8x256xf32> -> vector<8x256xf32>
    %70 = arith.addf %63, %69 : vector<8x256xf32>
    %c0_56 = arith.constant 0 : index
    %c0_57 = arith.constant 0 : index
    %71 = vector.load %arg4[%c0_56, %c0_57] : memref<8x1xf32, #tpu.memory_space<vmem>>, vector<8x1xf32>
    %72 = vector.broadcast %71 : vector<8x1xf32> to vector<8x256xf32>
    %73 = arith.addf %70, %72 : vector<8x256xf32>
    %cst_58 = arith.constant 0.000000e+00 : f32
    %74 = vector.broadcast %cst_58 : f32 to vector<8x256xf32>
    %75 = arith.maximumf %73, %74 : vector<8x256xf32>
    %c0_59 = arith.constant 0 : index
    %c128_60 = arith.constant 128 : index
    %76 = vector.load %arg11[%c0_59, %c128_60] : memref<8x512xf32, #tpu.memory_space<vmem>>, vector<8x256xf32>
    tpu.vector_store %arg11[%c0_59, %c128_60], %75 {strides = array<i32>} : memref<8x512xf32, #tpu.memory_space<vmem>>, vector<8x256xf32>,
    %c0_61 = arith.constant 0 : index
    %c111_62 = arith.constant 111 : index
    %77 = vector.load %arg11[%c0_61, %c111_62] : memref<8x512xf32, #tpu.memory_space<vmem>>, vector<8x256xf32>
    %78 = vector.broadcast %13 : vector<1x256xf32> to vector<8x256xf32>
    %79 = arith.mulf %77, %78 : vector<8x256xf32>
    %c0_63 = arith.constant 0 : index
    %c0_64 = arith.constant 0 : index
    %c0_65 = arith.constant 0 : index
    %80 = vector.load %arg5[%c0_63, %c0_64, %c0_65] : memref<9x8x8xf32, #tpu.memory_space<vmem>>, vector<1x8x8xf32>
    %81 = vector.shape_cast %80 : vector<1x8x8xf32> to vector<8x8xf32>
    %cst_66 = arith.constant dense<0.000000e+00> : vector<8x256xf32>
    %82 = tpu.matmul %81, %79, %cst_66 {dimension_numbers = #tpu.dot_dimension_numbers<[1], [0], [0], [1], [0, 0, 1, 1], [], []>} : vector<8x8xf32>, vector<8x256xf32>, vector<8x256xf32> -> vector<8x256xf32>
    %c0_67 = arith.constant 0 : index
    %c112_68 = arith.constant 112 : index
    %83 = vector.load %arg11[%c0_67, %c112_68] : memref<8x512xf32, #tpu.memory_space<vmem>>, vector<8x256xf32>
    %c1_69 = arith.constant 1 : index
    %c0_70 = arith.constant 0 : index
    %c0_71 = arith.constant 0 : index
    %84 = vector.load %arg5[%c1_69, %c0_70, %c0_71] : memref<9x8x8xf32, #tpu.memory_space<vmem>>, vector<1x8x8xf32>
    %85 = vector.shape_cast %84 : vector<1x8x8xf32> to vector<8x8xf32>
    %cst_72 = arith.constant dense<0.000000e+00> : vector<8x256xf32>
    %86 = tpu.matmul %85, %83, %cst_72 {dimension_numbers = #tpu.dot_dimension_numbers<[1], [0], [0], [1], [0, 0, 1, 1], [], []>} : vector<8x8xf32>, vector<8x256xf32>, vector<8x256xf32> -> vector<8x256xf32>
    %87 = arith.addf %82, %86 : vector<8x256xf32>
    %c0_73 = arith.constant 0 : index
    %c113_74 = arith.constant 113 : index
    %88 = vector.load %arg11[%c0_73, %c113_74] : memref<8x512xf32, #tpu.memory_space<vmem>>, vector<8x256xf32>
    %89 = vector.broadcast %14 : vector<1x256xf32> to vector<8x256xf32>
    %90 = arith.mulf %88, %89 : vector<8x256xf32>
    %c2_75 = arith.constant 2 : index
    %c0_76 = arith.constant 0 : index
    %c0_77 = arith.constant 0 : index
    %91 = vector.load %arg5[%c2_75, %c0_76, %c0_77] : memref<9x8x8xf32, #tpu.memory_space<vmem>>, vector<1x8x8xf32>
    %92 = vector.shape_cast %91 : vector<1x8x8xf32> to vector<8x8xf32>
    %cst_78 = arith.constant dense<0.000000e+00> : vector<8x256xf32>
    %93 = tpu.matmul %92, %90, %cst_78 {dimension_numbers = #tpu.dot_dimension_numbers<[1], [0], [0], [1], [0, 0, 1, 1], [], []>} : vector<8x8xf32>, vector<8x256xf32>, vector<8x256xf32> -> vector<8x256xf32>
    %94 = arith.addf %87, %93 : vector<8x256xf32>
    %c0_79 = arith.constant 0 : index
    %c127_80 = arith.constant 127 : index
    %95 = vector.load %arg11[%c0_79, %c127_80] : memref<8x512xf32, #tpu.memory_space<vmem>>, vector<8x256xf32>
    %96 = vector.broadcast %13 : vector<1x256xf32> to vector<8x256xf32>
    %97 = arith.mulf %95, %96 : vector<8x256xf32>
    %c3_81 = arith.constant 3 : index
    %c0_82 = arith.constant 0 : index
    %c0_83 = arith.constant 0 : index
    %98 = vector.load %arg5[%c3_81, %c0_82, %c0_83] : memref<9x8x8xf32, #tpu.memory_space<vmem>>, vector<1x8x8xf32>
    %99 = vector.shape_cast %98 : vector<1x8x8xf32> to vector<8x8xf32>
    %cst_84 = arith.constant dense<0.000000e+00> : vector<8x256xf32>
    %100 = tpu.matmul %99, %97, %cst_84 {dimension_numbers = #tpu.dot_dimension_numbers<[1], [0], [0], [1], [0, 0, 1, 1], [], []>} : vector<8x8xf32>, vector<8x256xf32>, vector<8x256xf32> -> vector<8x256xf32>
    %101 = arith.addf %94, %100 : vector<8x256xf32>
    %c0_85 = arith.constant 0 : index
    %c128_86 = arith.constant 128 : index
    %102 = vector.load %arg11[%c0_85, %c128_86] : memref<8x512xf32, #tpu.memory_space<vmem>>, vector<8x256xf32>
    %c4_87 = arith.constant 4 : index
    %c0_88 = arith.constant 0 : index
    %c0_89 = arith.constant 0 : index
    %103 = vector.load %arg5[%c4_87, %c0_88, %c0_89] : memref<9x8x8xf32, #tpu.memory_space<vmem>>, vector<1x8x8xf32>
    %104 = vector.shape_cast %103 : vector<1x8x8xf32> to vector<8x8xf32>
    %cst_90 = arith.constant dense<0.000000e+00> : vector<8x256xf32>
    %105 = tpu.matmul %104, %102, %cst_90 {dimension_numbers = #tpu.dot_dimension_numbers<[1], [0], [0], [1], [0, 0, 1, 1], [], []>} : vector<8x8xf32>, vector<8x256xf32>, vector<8x256xf32> -> vector<8x256xf32>
    %106 = arith.addf %101, %105 : vector<8x256xf32>
    %c0_91 = arith.constant 0 : index
    %c129_92 = arith.constant 129 : index
    %107 = vector.load %arg11[%c0_91, %c129_92] : memref<8x512xf32, #tpu.memory_space<vmem>>, vector<8x256xf32>
    %108 = vector.broadcast %14 : vector<1x256xf32> to vector<8x256xf32>
    %109 = arith.mulf %107, %108 : vector<8x256xf32>
    %c5_93 = arith.constant 5 : index
    %c0_94 = arith.constant 0 : index
    %c0_95 = arith.constant 0 : index
    %110 = vector.load %arg5[%c5_93, %c0_94, %c0_95] : memref<9x8x8xf32, #tpu.memory_space<vmem>>, vector<1x8x8xf32>
    %111 = vector.shape_cast %110 : vector<1x8x8xf32> to vector<8x8xf32>
    %cst_96 = arith.constant dense<0.000000e+00> : vector<8x256xf32>
    %112 = tpu.matmul %111, %109, %cst_96 {dimension_numbers = #tpu.dot_dimension_numbers<[1], [0], [0], [1], [0, 0, 1, 1], [], []>} : vector<8x8xf32>, vector<8x256xf32>, vector<8x256xf32> -> vector<8x256xf32>
    %113 = arith.addf %106, %112 : vector<8x256xf32>
    %c0_97 = arith.constant 0 : index
    %c143_98 = arith.constant 143 : index
    %114 = vector.load %arg11[%c0_97, %c143_98] : memref<8x512xf32, #tpu.memory_space<vmem>>, vector<8x256xf32>
    %115 = vector.broadcast %13 : vector<1x256xf32> to vector<8x256xf32>
    %116 = arith.mulf %114, %115 : vector<8x256xf32>
    %c6_99 = arith.constant 6 : index
    %c0_100 = arith.constant 0 : index
    %c0_101 = arith.constant 0 : index
    %117 = vector.load %arg5[%c6_99, %c0_100, %c0_101] : memref<9x8x8xf32, #tpu.memory_space<vmem>>, vector<1x8x8xf32>
    %118 = vector.shape_cast %117 : vector<1x8x8xf32> to vector<8x8xf32>
    %cst_102 = arith.constant dense<0.000000e+00> : vector<8x256xf32>
    %119 = tpu.matmul %118, %116, %cst_102 {dimension_numbers = #tpu.dot_dimension_numbers<[1], [0], [0], [1], [0, 0, 1, 1], [], []>} : vector<8x8xf32>, vector<8x256xf32>, vector<8x256xf32> -> vector<8x256xf32>
    %120 = arith.addf %113, %119 : vector<8x256xf32>
    %c0_103 = arith.constant 0 : index
    %c144_104 = arith.constant 144 : index
    %121 = vector.load %arg11[%c0_103, %c144_104] : memref<8x512xf32, #tpu.memory_space<vmem>>, vector<8x256xf32>
    %c7_105 = arith.constant 7 : index
    %c0_106 = arith.constant 0 : index
    %c0_107 = arith.constant 0 : index
    %122 = vector.load %arg5[%c7_105, %c0_106, %c0_107] : memref<9x8x8xf32, #tpu.memory_space<vmem>>, vector<1x8x8xf32>
    %123 = vector.shape_cast %122 : vector<1x8x8xf32> to vector<8x8xf32>
    %cst_108 = arith.constant dense<0.000000e+00> : vector<8x256xf32>
    %124 = tpu.matmul %123, %121, %cst_108 {dimension_numbers = #tpu.dot_dimension_numbers<[1], [0], [0], [1], [0, 0, 1, 1], [], []>} : vector<8x8xf32>, vector<8x256xf32>, vector<8x256xf32> -> vector<8x256xf32>
    %125 = arith.addf %120, %124 : vector<8x256xf32>
    %c0_109 = arith.constant 0 : index
    %c145_110 = arith.constant 145 : index
    %126 = vector.load %arg11[%c0_109, %c145_110] : memref<8x512xf32, #tpu.memory_space<vmem>>, vector<8x256xf32>
    %127 = vector.broadcast %14 : vector<1x256xf32> to vector<8x256xf32>
    %128 = arith.mulf %126, %127 : vector<8x256xf32>
    %c8_111 = arith.constant 8 : index
    %c0_112 = arith.constant 0 : index
    %c0_113 = arith.constant 0 : index
    %129 = vector.load %arg5[%c8_111, %c0_112, %c0_113] : memref<9x8x8xf32, #tpu.memory_space<vmem>>, vector<1x8x8xf32>
    %130 = vector.shape_cast %129 : vector<1x8x8xf32> to vector<8x8xf32>
    %cst_114 = arith.constant dense<0.000000e+00> : vector<8x256xf32>
    %131 = tpu.matmul %130, %128, %cst_114 {dimension_numbers = #tpu.dot_dimension_numbers<[1], [0], [0], [1], [0, 0, 1, 1], [], []>} : vector<8x8xf32>, vector<8x256xf32>, vector<8x256xf32> -> vector<8x256xf32>
    %132 = arith.addf %125, %131 : vector<8x256xf32>
    %c0_115 = arith.constant 0 : index
    %c0_116 = arith.constant 0 : index
    %133 = vector.load %arg6[%c0_115, %c0_116] : memref<8x1xf32, #tpu.memory_space<vmem>>, vector<8x1xf32>
    %134 = vector.broadcast %133 : vector<8x1xf32> to vector<8x256xf32>
    %135 = arith.addf %132, %134 : vector<8x256xf32>
    %c0_117 = arith.constant 0 : index
    %c0_118 = arith.constant 0 : index
    %136 = vector.load %arg7[%c0_117, %c0_118] : memref<8x8xf32, #tpu.memory_space<vmem>>, vector<8x8xf32>
    %c0_119 = arith.constant 0 : index
    %c0_120 = arith.constant 0 : index
    %c0_121 = arith.constant 0 : index
    %137 = vector.load %arg1[%c0_119, %c0_120, %c0_121] : memref<1x8x256xf32, #tpu.memory_space<vmem>>, vector<1x8x256xf32>
    %138 = vector.shape_cast %137 : vector<1x8x256xf32> to vector<8x256xf32>
    %cst_122 = arith.constant dense<0.000000e+00> : vector<8x256xf32>
    %139 = tpu.matmul %136, %138, %cst_122 {dimension_numbers = #tpu.dot_dimension_numbers<[1], [0], [0], [1], [0, 0, 1, 1], [], []>} : vector<8x8xf32>, vector<8x256xf32>, vector<8x256xf32> -> vector<8x256xf32>
    %c0_123 = arith.constant 0 : index
    %c0_124 = arith.constant 0 : index
    %140 = vector.load %arg8[%c0_123, %c0_124] : memref<8x1xf32, #tpu.memory_space<vmem>>, vector<8x1xf32>
    %141 = vector.broadcast %140 : vector<8x1xf32> to vector<8x256xf32>
    %142 = arith.addf %139, %141 : vector<8x256xf32>
    %143 = arith.addf %135, %142 : vector<8x256xf32>
    %c0_125 = arith.constant 0 : index
    %c0_126 = arith.constant 0 : index
    %c0_127 = arith.constant 0 : index
    %144 = vector.load %arg9[%c0_125, %c0_126, %c0_127] : memref<1x8x256xf32, #tpu.memory_space<vmem>>, vector<1x8x256xf32>
    %145 = vector.shape_cast %144 : vector<1x8x256xf32> to vector<8x256xf32>
    %146 = vector.shape_cast %143 : vector<8x256xf32> to vector<1x8x256xf32>
    tpu.vector_store %arg9[%c0_125, %c0_126, %c0_127], %146 {strides = array<i32>} : memref<1x8x256xf32, #tpu.memory_space<vmem>>, vector<1x8x256xf32>,
    return
  }
  func.func @transform_0(%arg0: i32) -> (i32, i32, i32) {
    %c0_i32 = arith.constant 0 : i32
    %c0_i32_0 = arith.constant 0 : i32
    %c0_i32_1 = arith.constant 0 : i32
    return %arg0, %c0_i32, %c0_i32_0 : i32, i32, i32
  }
  func.func @transform_1(%arg0: i32) -> (i32, i32) {
    %c0_i32 = arith.constant 0 : i32
    %c0_i32_0 = arith.constant 0 : i32
    %c0_i32_1 = arith.constant 0 : i32
    return %c0_i32, %c0_i32_0 : i32, i32
  }
  func.func @transform_2(%arg0: i32) -> (i32, i32, i32) {
    %c0_i32 = arith.constant 0 : i32
    %c0_i32_0 = arith.constant 0 : i32
    %c0_i32_1 = arith.constant 0 : i32
    %c0_i32_2 = arith.constant 0 : i32
    return %c0_i32, %c0_i32_0, %c0_i32_1 : i32, i32, i32
  }
  func.func @transform_3(%arg0: i32) -> (i32, i32) {
    %c0_i32 = arith.constant 0 : i32
    %c0_i32_0 = arith.constant 0 : i32
    %c0_i32_1 = arith.constant 0 : i32
    return %c0_i32, %c0_i32_0 : i32, i32
  }
  func.func @transform_4(%arg0: i32) -> (i32, i32, i32) {
    %c0_i32 = arith.constant 0 : i32
    %c0_i32_0 = arith.constant 0 : i32
    %c0_i32_1 = arith.constant 0 : i32
    %c0_i32_2 = arith.constant 0 : i32
    return %c0_i32, %c0_i32_0, %c0_i32_1 : i32, i32, i32
  }
  func.func @transform_5(%arg0: i32) -> (i32, i32) {
    %c0_i32 = arith.constant 0 : i32
    %c0_i32_0 = arith.constant 0 : i32
    %c0_i32_1 = arith.constant 0 : i32
    return %c0_i32, %c0_i32_0 : i32, i32
  }
  func.func @transform_6(%arg0: i32) -> (i32, i32) {
    %c0_i32 = arith.constant 0 : i32
    %c0_i32_0 = arith.constant 0 : i32
    %c0_i32_1 = arith.constant 0 : i32
    return %c0_i32, %c0_i32_0 : i32, i32
  }
  func.func @transform_7(%arg0: i32) -> (i32, i32) {
    %c0_i32 = arith.constant 0 : i32
    %c0_i32_0 = arith.constant 0 : i32
    %c0_i32_1 = arith.constant 0 : i32
    return %c0_i32, %c0_i32_0 : i32, i32
  }
  func.func @transform_8(%arg0: i32) -> (i32, i32, i32) {
    %c0_i32 = arith.constant 0 : i32
    %c0_i32_0 = arith.constant 0 : i32
    %c0_i32_1 = arith.constant 0 : i32
    return %arg0, %c0_i32, %c0_i32_0 : i32, i32, i32
  }
}

</mosaic_0001>

<bundles_post_ra>
// kernel: tpu_custom_call.1
= control target key start
LH: loop header
LB: loop body
LE: loop exit
PB: predicated region body
PF: predicated region fallthrough
CT: control target
= control target key end

     0   :  { %13 = vsyncpa [#allocation5], 0  ;;  %s2924_s0 = inlined_call_operand.vmem [shape: f32[2,8,256], index: 0, kind: input, shape index: {}]   ;;  %s2925_s1 = inlined_call_operand.vmem [shape: f32[2,256], index: 1, kind: input, shape index: {}]   ;;  %s2926_s2 = inlined_call_operand.vmem [shape: f32[9,8,8], index: 2, kind: input, shape index: {}]   ;;  %s2927_s3 = inlined_call_operand.vmem [shape: f32[8,1], index: 3, kind: input, shape index: {}]   ;;  %s2928_s4 = inlined_call_operand.vmem [shape: f32[9,8,8], index: 4, kind: input, shape index: {}]   ;;  %s2929_s5 = inlined_call_operand.vmem [shape: f32[8,1], index: 5, kind: input, shape index: {}]   ;;  %s2930_s6 = inlined_call_operand.vmem [shape: f32[8,8], index: 6, kind: input, shape index: {}]   ;;  %s2931_s7 = inlined_call_operand.vmem [shape: f32[8,1], index: 7, kind: input, shape index: {}]   ;;  %s2932_s8 = inlined_call_operand.hbm [shape: f32[2,8,256], index: 8, kind: output, shape index: {}]  }
   0x1   :  { %15 = vsyncpa [#allocation5 + $0x1], 0  ;;  %s2482_s27 = smov 0   ;;  %s2484_s28 = smov 0  }
   0x2   :  { %s2486_s29 = smov 0   ;;  %s2488_s30 = smov 0  }
   0x3 LB: > { %s2503_s9 = sadd.s32 4294967295, %s2424_s30   ;;  %s2223_s10 = sadd.s32 4294967294, %s2424_s30   ;;  %s2424_s30 = sphi %s2488_s30, %s2938_s30   ;;  %s2420_s29 = sphi %s2486_s29, %s2937_s29   ;;  %s2416_s28 = sphi %s2484_s28, %s2936_s28   ;;  %s2412_s27 = sphi %s2482_s27, %s2935_s27  }
   0x4   : > { %s2507_s11 = sadd.s32 1, %s2424_s30   ;;  %s201_s12 = sadd.s32 1, %s2420_s29 }
   0x5   : > { %s198_s13 = ssub.s32 %s2424_s30, %s2507_s11  ;;  %p211_p0 = scmp.ne.s32.totalorder %s2420_s29, %s2416_s28 }
   0x6   : > { %p199_p1 = scmp.eq.s32.totalorder %s198_s13, 0  ;;  %p212_p2 = scmp.eq.s32.totalorder %s2503_s9, 1 }
   0x7   : > { %p217_p3 = scmp.ne.s32.totalorder %s2416_s28, %s2412_s27  ;;  %p218_p4 = scmp.eq.s32.totalorder %s2223_s10, 1 }
   0x8   : > { %s2518_s14 = scalar_select %p199_p1, %s2420_s29, %s201_s12  }
   0x9   : > { %p2520_p5 = por %p212_p2, %p211_p0  ;;  %p2524_p6 = por %p218_p4, %p217_p3 }
   0xa   : > { %p2226_p7 = scmp.ge.s32.totalorder %s2424_s30, 1  ;;  %p265_p8 = scmp.lt.s32.totalorder %s2424_s30, 3 }
   0xc   : > { %p266_p9 = pnand %p2226_p7, %p265_p8 }
   0xd   : > { %v321_v0 = vlaneseq (!%p266_p9)  ;;  %v2426_v1 = vmov (!%p266_p9), 0.0   ;;  %v314_v3 = vld [vmem:[%s2925_s1] ss:$2 sm:$0x3] (!%p266_p9)  ;;  %p299_p10 = scmp.lt.s32.totalorder (!%p266_p9), %s2503_s9, 1  ;;  %s2427_s21 = smov (!%p266_p9), 111  }
   0xe   : > { %269 = sbr.rel (%p266_p9) target bundleno = 959 (0x3bf), region = 52  ;;  %426 = vmatprep.mubr.f32.mxu0 (!%p266_p9), %v2426_v1  ;;  %1318 = vmatprep.mubr.f32.mxu1 (!%p266_p9), %v2426_v1  ;;  %v2230_v4 = vld [vmem:[%s2925_s1 + $0x1] ss:$2 sm:$0x3] (!%p266_p9)  ;;  %s2428_s22 = smov (!%p266_p9), 113   ;;  %vm333_vm0 = vcmask (!%p266_p9), 908288  }
   0xf   : > { %v322_v2 = vshrl.u32 (!%p266_p9), %v321_v0, 7  ;;  %s2429_s25 = smov (!%p266_p9), 127   ;;  %s2430_s13 = smov (!%p266_p9), 1   ;;  %vm534_vm1 = vcmask (!%p266_p9), 924672   ;;  %vm638_vm2 = vcmask (!%p266_p9), 1039360   ;;  %vm657_vm3 = vcmask (!%p266_p9), 7168  }
  0x10   : > { %s2431_s17 = smov (!%p266_p9), 15   ;;  %s2432_s18 = smov (!%p266_p9), 16   ;;  %vm353_vm4 = vcmask (!%p266_p9), 130048   ;;  %vm553_vm5 = vcmask (!%p266_p9), 121856   ;;  %v2231_v45 = vld [vmem:[%s2926_s2 + $0x8] sm:$0xff] (!%p266_p9)  ;;  %vm358_vm6 = vcmask (!%p266_p9), 64512  }
  0x11   : > { %v323_v5 = vsub.s32 (!%p266_p9), 0, %v322_v2  ;;  %v327_v6 = vsub.s32 (!%p266_p9), 1, %v322_v2  ;;  %s2433_s19 = smov (!%p266_p9), 17   ;;  %vm442_vm7 = vcmask (!%p266_p9), 138240   ;;  %v1217_v57 = vld [vmem:[%s2927_s3] sm:$0xff] (!%p266_p9)  ;;  %v2435_v58 = vmov (!%p266_p9), 0  }
  0x12   : > { %2360 = vset.pattern.permute.xlu0 (!%p266_p9), %v2435_v58  ;;  %2361 = vset.pattern.permute.xlu1 (!%p266_p9), %v2435_v58  ;;  %v341_v0 = vld [vmem:[%s2926_s2] sm:$0xff] (!%p266_p9)  ;;  %vm1034_vm8 = vcmask (!%p266_p9), 916480   ;;  %s296_s10 = sand.u32 (!%p266_p9), 1, %s2416_s28  }
  0x13   : > { %v324_v7 = vrot.slane (!%p266_p9), %v314_v3, %v323_v5  ;;  %v525_v8 = vrot.slane (!%p266_p9), %v2230_v4, %v323_v5  ;;  %v328_v9 = vrot.slane (!%p266_p9), %v314_v3, %v327_v6  ;;  %v529_v10 = vrot.slane (!%p266_p9), %v2230_v4, %v327_v6  ;;  %v2246_v58 = vld [vmem:[%s2926_s2 + $0x40] sm:$0xff] (!%p266_p9) }
  0x15   : > { %329 = vrot.lane.b32.xlu0 %v324_v7, %s2427_s21  ;;  %530 = vrot.lane.b32.xlu1 %v525_v8, %s2428_s22  ;;  %s300_s23 = scalar_select %p299_p10, %s2503_s9, 1 }
  0x17   : > { %s2271_s24 = sshll.u32 %s300_s23, 4 }
  0x18   : > { %s303_s12 = scalar_lea.vmem %s2924_s0, %s2271_s24  ;;  %s2434_s24 = smov 112  }
  0x19   : > { %331 = vrot.lane.b32.xlu0 %v328_v9, %s2427_s21  ;;  %532 = vrot.lane.b32.xlu1 %v529_v10, %s2428_s22  ;;  %v2551_v11 = vld [vmem:[%s303_s12] sm:$0xff]  ;;  %v2553_v12 = vld [vmem:[%s303_s12 + $0x8] sm:$0xff]  ;;  %s2227_s12 = sshll.u32 %s296_s10, 4 }
  0x1a   : > { %v2558_v13 = vmax.f32 %v2551_v11, 0.0  ;;  %v2561_v14 = vmax.f32 %v2553_v12, 0.0 }
  0x1d   : > { %636 = vrot.lane.b32.xlu1 %v328_v9, %s2429_s25  ;;  %634 = vrot.lane.b32.xlu0 %v324_v7, %s2429_s25 }
  0x21   : > { %821 = vrot.lane.b32.xlu1 %v529_v10, %s2430_s13  ;;  %819 = vrot.lane.b32.xlu0 %v525_v8, %s2430_s13 }
  0x25   : > { %923 = vrot.lane.b32.xlu1 %v328_v9, %s2431_s17  ;;  %921 = vrot.lane.b32.xlu0 %v324_v7, %s2431_s17  ;;  %v2234_v9 = vld [vmem:[%s2926_s2 + $0x10] sm:$0xff] }
  0x29   : > { %349 = vrot.lane.b32.xlu0 %v2558_v13, %s2432_s18  ;;  %351 = vrot.lane.b32.xlu1 %v2561_v14, %s2432_s18 }
  0x2d   : > { %347 = vrot.lane.b32.xlu0 %v2426_v1, %s2432_s18  ;;  %1115 = vrot.lane.b32.xlu1 %v525_v8, %s2433_s19 }
  0x31   : > { %1117 = vrot.lane.b32.xlu0 %v529_v10, %s2433_s19 }
  0x87   : > { %v330_v15 = vpop.permute.xlu0 %329  ;;  %v531_v16 = vpop.permute.xlu1 %530 }
  0x88   : > { %v2593_v26 = vmul.f32 0.0, %v330_v15  ;;  %v2602_v30 = vmul.f32 0.0, %v531_v16 }
  0x8b   : > { %v2571_v17 = vpop.permute.xlu0 %331  ;;  %v2573_v18 = vpop.permute.xlu1 %532 }
  0x8c   : > { %v2577_v19 = vsel %vm333_vm0, %v330_v15, %v2571_v17  ;;  %v340_v20 = vmul.f32 %v2571_v17, %v2561_v14  ;;  %v2583_v21 = vsel %vm534_vm1, %v531_v16, %v2573_v18  ;;  %v541_v27 = vmul.f32 %v2573_v18, %v2561_v14 }
  0x8d   : > { %v339_v22 = vmul.f32 %v2577_v19, %v2558_v13  ;;  %v540_v23 = vmul.f32 %v2583_v21, %v2558_v13 }
  0x8e   : > { %440 = vrot.lane.b32.xlu0 %v340_v20, %s2433_s19 }
  0x8f   : > { %438 = vrot.lane.b32.xlu1 %v339_v22, %s2433_s19  ;;  %v2591_v24 = vpop.permute.xlu1 %636  ;;  %v635_v25 = vpop.permute.xlu0 %634  ;;  %v2236_v22 = vld [vmem:[%s2926_s2 + $0x18] sm:$0xff] }
  0x90   : > { %v2606_v31 = vsel %vm638_vm2, %v635_v25, %v2591_v24  ;;  %v645_v32 = vmul.f32 %v2591_v24, %v2561_v14  ;;  %v2624_v38 = vmul.f32 0.0, %v635_v25 }
  0x91   : > { %v644_v33 = vmul.f32 %v2606_v31, %v2558_v13 }
  0x92   : > { %549 = vrot.lane.b32.xlu0 %v540_v23, %s2431_s17 }
  0x93   : > { %436 = vrot.lane.b32.xlu1 %v2593_v26, %s2433_s19  ;;  %v822_v28 = vpop.permute.xlu1 %821  ;;  %v2600_v29 = vpop.permute.xlu0 %819 }
  0x94   : > { %v2617_v34 = vsel %vm657_vm3, %v2600_v29, %v822_v28  ;;  %v827_v42 = vmul.f32 %v2600_v29, %v2558_v13  ;;  %v2633_v43 = vmul.f32 0.0, %v822_v28 }
  0x95   : > { %v828_v37 = vmul.f32 %v2617_v34, %v2561_v14 }
  0x96   : > { %547 = vrot.lane.b32.xlu0 %v2602_v30, %s2431_s17 }
  0x97   : > { %551 = vrot.lane.b32.xlu1 %v541_v27, %s2431_s17  ;;  %v924_v35 = vpop.permute.xlu1 %923  ;;  %v2619_v36 = vpop.permute.xlu0 %921 }
  0x98   : > { %v2640_v46 = vsel %vm553_vm5, %v2619_v36, %v924_v35  ;;  %v2643_v48 = vmul.f32 0.0, %v924_v35  ;;  %v929_v50 = vmul.f32 %v2619_v36, %v2558_v13 }
  0x99   : > { %v930_v49 = vmul.f32 %v2640_v46, %v2561_v14 }
  0x9a   : > { %655 = vrot.lane.b32.xlu0 %v645_v32, %s2430_s13 }
  0x9b   : > { %653 = vrot.lane.b32.xlu1 %v644_v33, %s2430_s13  ;;  %v350_v39 = vpop.permute.xlu0 %349  ;;  %v352_v40 = vpop.permute.xlu1 %351 }
  0x9c   : > { %v355_v41 = vsel %vm353_vm4, %v350_v39, %v352_v40  ;;  %v2240_v40 = vld [vmem:[%s2926_s2 + $0x28] sm:$0xff] }
  0x9d   : > { %362 = vmatprep.subr.mxu0 %v355_v41 }
  0x9e   : > { %837 = vrot.lane.b32.xlu0 %v828_v37, %s2429_s25 }
  0x9f   : > { %651 = vrot.lane.b32.xlu1 %v2624_v38, %s2430_s13  ;;  %v348_v44 = vpop.permute.xlu0 %347  ;;  %v2657_v51 = vpop.permute.xlu1 %1115 }
  0xa0   : > { %v354_v47 = vsel %vm353_vm4, %v348_v44, %v350_v39  ;;  %v1123_v56 = vmul.f32 %v2657_v51, %v2558_v13 }
  0xa1   : > { %363 = vmatpush1.msra.mxu0 %v354_v47  ;;  %v2242_v47 = vld [vmem:[%s2926_s2 + $0x30] sm:$0xff] }
  0xa2   : > { %835 = vrot.lane.b32.xlu0 %v827_v42, %s2429_s25  ;;  %2232 = vmatmul.mubr.msk.f32.vlgmr.msra.gmra.mrb[0].mxu0 %vm358_vm6, %v2231_v45 }
  0xa3   : > { %839 = vrot.lane.b32.xlu1 %v2633_v43, %s2429_s25  ;;  %514 = vmatprep.mubr.f32.mxu0 %v2426_v1  ;;  %v1118_v52 = vpop.permute.xlu0 %1117 }
  0xa4   : > { %v2664_v53 = vsel %vm442_vm7, %v2657_v51, %v1118_v52  ;;  %v2666_v54 = vmul.f32 0.0, %v1118_v52 }
  0xa5   : > { %v1124_v55 = vmul.f32 %v2664_v53, %v2561_v14 }
  0xa6   : > { %941 = vrot.lane.b32.xlu0 %v2643_v48, %s2428_s22 }
  0xa7   : > { %939 = vrot.lane.b32.xlu1 %v930_v49, %s2428_s22 }
  0xaa   : > { %1030 = vrot.lane.b32.xlu0 %v2561_v14, %s2434_s24 }
  0xab   : > { %937 = vrot.lane.b32.xlu1 %v929_v50, %s2428_s22 }
  0xae   : > { %1028 = vrot.lane.b32.xlu0 %v2558_v13, %s2434_s24 }
  0xaf   : > { %1032 = vrot.lane.b32.xlu1 %v2426_v1, %s2434_s24 }
  0xb2   : > { %1135 = vrot.lane.b32.xlu0 %v2666_v54, %s2427_s21 }
  0xb3   : > { %1133 = vrot.lane.b32.xlu1 %v1124_v55, %s2427_s21 }
  0xb6   : > { %1220 = vperm.xlu0 %2360, %v1217_v57  }
  0xb7   : > { %1131 = vrot.lane.b32.xlu1 %v1123_v56, %s2427_s21  ;;  %v2244_v56 = vld [vmem:[%s2926_s2 + $0x38] sm:$0xff] }
  0xba   : > { %1241 = vrot.lane.b32.xlu0 %v2426_v1, %s2432_s18 }
 0x100   : > { %v441_v59 = vpop.permute.xlu0 %440 }
 0x101   : > { %v439_v60 = vpop.permute.xlu1 %438 }
 0x102   : > { %v444_v61 = vsel %vm442_vm7, %v439_v60, %v441_v59 }
 0x103   : > { %450 = vmatprep.subr.mxu0 %v444_v61 }
 0x104   : > { %v550_v62 = vpop.permute.xlu0 %549 }
 0x105   : > { %v437_v63 = vpop.permute.xlu1 %436 }
 0x106   : > { %v443_v2 = vsel %vm442_vm7, %v437_v63, %v439_v60 }
 0x107   : > { %451 = vmatpush1.msra.mxu0 %v443_v2 }
 0x108   : > { %v548_v3 = vpop.permute.xlu0 %547  ;;  %2233 = vmatmul.mubr.msk.f32.vlgmr.msra.gmra.mrb[0].mxu0 %vm358_vm6, %v341_v0 }
 0x109   : > { %v552_v4 = vpop.permute.xlu1 %551  ;;  %625 = vmatprep.mubr.f32.mxu0 %v2426_v1  ;;  %v554_v6 = vsel %vm553_vm5, %v548_v3, %v550_v62 }
 0x10a   : > { %v555_v5 = vsel %vm553_vm5, %v550_v62, %v552_v4 }
 0x10b   : > { %561 = vmatprep.subr.mxu0 %v555_v5 }
 0x10c   : > { %562 = vmatpush1.msra.mxu0 %v554_v6  ;;  %v656_v7 = vpop.permute.xlu0 %655 }
 0x10d   : > { %v654_v8 = vpop.permute.xlu1 %653 }
 0x10e   : > { %v659_v10 = vsel %vm657_vm3, %v654_v8, %v656_v7 }
 0x10f   : > { %665 = vmatprep.subr.mxu0 %v659_v10 }
 0x110   : > { %2235 = vmatmul.mubr.msk.f32.vlgmr.msra.gmra.mrb[0].mxu0 %vm358_vm6, %v2234_v9  ;;  %v838_v20 = vpop.permute.xlu0 %837 }
 0x111   : > { %v652_v15 = vpop.permute.xlu1 %651  ;;  %729 = vmatprep.mubr.f32.mxu0 %v2426_v1 }
 0x112   : > { %v658_v16 = vsel %vm657_vm3, %v652_v15, %v654_v8  ;;  %v1235_v15 = vld [vmem:[%s2928_s4] sm:$0xff] }
 0x113   : > { %666 = vmatpush1.msra.mxu0 %v658_v16 }
 0x114   : > { %743 = vmatprep.subr.mxu0 %v2561_v14  ;;  %v836_v27 = vpop.permute.xlu0 %835  ;;  %v2238_v14 = vld [vmem:[%s2926_s2 + $0x20] sm:$0xff] }
 0x115   : > { %v840_v23 = vpop.permute.xlu1 %839  ;;  %v841_v33 = vsel %vm638_vm2, %v836_v27, %v838_v20 }
 0x116   : > { %v842_v25 = vsel %vm638_vm2, %v838_v20, %v840_v23 }
 0x118   : > { %2237 = vmatmul.mubr.msk.f32.vlgmr.msra.gmra.mrb[0].mxu0 %vm358_vm6, %v2236_v22  ;;  %v942_v32 = vpop.permute.xlu0 %941 }
 0x119   : > { %744 = vmatpush1.msra.mxu0 %v2558_v13  ;;  %807 = vmatprep.mubr.f32.mxu0 %v2426_v1  ;;  %v940_v28 = vpop.permute.xlu1 %939 }
 0x11a   : > { %848 = vmatprep.subr.mxu0 %v842_v25  ;;  %v944_v35 = vsel %vm534_vm1, %v940_v28, %v942_v32  ;;  %v2251_v32 = vld [vmem:[%s2928_s4 + $0x10] sm:$0xff] }
 0x11c   : > { %v1031_v13 = vpop.permute.xlu0 %1030 }
 0x11d   : > { %v938_v37 = vpop.permute.xlu1 %937 }
 0x11e   : > { %v943_v41 = vsel %vm534_vm1, %v938_v37, %v940_v28 }
 0x120   : > { %2239 = vmatmul.mubr.msk.f32.vlgmr.msra.gmra.mrb[0].mxu0 %vm358_vm6, %v2238_v14  ;;  %v1029_v44 = vpop.permute.xlu0 %1028 }
 0x121   : > { %849 = vmatpush1.msra.mxu0 %v841_v33  ;;  %912 = vmatprep.mubr.f32.mxu0 %v2426_v1  ;;  %v1033_v39 = vpop.permute.xlu1 %1032  ;;  %v1035_v50 = vsel %vm1034_vm8, %v1029_v44, %v1031_v13 }
 0x122   : > { %950 = vmatprep.subr.mxu0 %v944_v35  ;;  %v1036_v42 = vsel %vm1034_vm8, %v1031_v13, %v1033_v39  ;;  %v2253_v13 = vld [vmem:[%s2928_s4 + $0x18] sm:$0xff] }
 0x124   : > { %v1136_v45 = vpop.permute.xlu0 %1135 }
 0x125   : > { %v1134_v49 = vpop.permute.xlu1 %1133 }
 0x126   : > { %v1138_v52 = vsel %vm333_vm0, %v1134_v49, %v1136_v45 }
 0x128   : > { %2241 = vmatmul.mubr.msk.f32.vlgmr.msra.gmra.mrb[0].mxu0 %vm358_vm6, %v2240_v40 }
 0x129   : > { %951 = vmatpush1.msra.mxu0 %v943_v41  ;;  %1014 = vmatprep.mubr.f32.mxu0 %v2426_v1  ;;  %v1132_v55 = vpop.permute.xlu1 %1131 }
 0x12a   : > { %1042 = vmatprep.subr.mxu0 %v1036_v42  ;;  %v1137_v57 = vsel %vm333_vm0, %v1132_v55, %v1134_v49  ;;  %v2255_v42 = vld [vmem:[%s2928_s4 + $0x20] sm:$0xff] }
 0x130   : > { %2243 = vmatmul.mubr.msk.f32.vlgmr.msra.gmra.mrb[0].mxu0 %vm358_vm6, %v2242_v47 }
 0x131   : > { %1043 = vmatpush1.msra.mxu0 %v1035_v50  ;;  %1106 = vmatprep.mubr.f32.mxu0 %v2426_v1 }
 0x132   : > { %1144 = vmatprep.subr.mxu0 %v1138_v52  ;;  %v2257_v52 = vld [vmem:[%s2928_s4 + $0x28] sm:$0xff] }
 0x135   : > { %v1221_v59 = vpop.permute.xlu0 %1220 }
 0x138   : > { %2245 = vmatmul.mubr.msk.f32.vlgmr.msra.gmra.mrb[0].mxu0 %vm358_vm6, %v2244_v56 }
 0x139   : > { %1145 = vmatpush1.msra.mxu0 %v1137_v57  ;;  %1208 = vmatprep.mubr.f32.mxu0 %v2426_v1 }
 0x140   : > { %2247 = vmatmul.mubr.msk.f32.vlgmr.msra.gmra.mrb[0].mxu0 %vm358_vm6, %v2246_v58 }
 0x213   : > { %v1210_v60 = vpop.f32.mrb[0].mxu0 }
 0x214   : > { %v1223_v61 = vadd.f32 %v1221_v59, %v1210_v60  ;;  %v1212_v62 = vpop.f32.mrb[1].mxu0 }
 0x215   : > { %v1224_v63 = vadd.f32 %v1221_v59, %v1212_v62  ;;  %v2259_v59 = vld [vmem:[%s2928_s4 + $0x30] sm:$0xff] }
 0x216   : > { %v2740_v0 = vmax.f32 %v1223_v61, 0.0 }
 0x217   : > { %v2742_v2 = vmax.f32 %v1224_v63, 0.0 }
 0x218   : > { %1243 = vrot.lane.b32.xlu1 %v2740_v0, %s2432_s18  ;;  %v1413_v4 = vmul.f32 %v2740_v0, %v2583_v21  ;;  %v1233_v5 = vmul.f32 %v2740_v0, %v2577_v19  ;;  %v1507_v21 = vmul.f32 %v2740_v0, %v2606_v31  ;;  %v1960_v31 = vmul.f32 %v2740_v0, %v2657_v51 }
 0x219   : > { %v1234_v3 = vmul.f32 %v2742_v2, %v2571_v17  ;;  %v1508_v17 = vmul.f32 %v2742_v2, %v2591_v24  ;;  %v1414_v6 = vmul.f32 %v2742_v2, %v2573_v18  ;;  %v1682_v19 = vmul.f32 %v2742_v2, %v2617_v34  ;;  %v2065_v34 = vld [vmem:[%s2931_s7] sm:$0xff] }
 0x21a   : > { %v1681_v24 = vmul.f32 %v2740_v0, %v2600_v29  ;;  %v1776_v18 = vmul.f32 %v2742_v2, %v2640_v46  ;;  %v2054_v29 = vld [vmem:[%s2929_s5] sm:$0xff] }
 0x21b   : > { %1332 = vrot.lane.b32.xlu0 %v1234_v3, %s2433_s19 }
 0x21c   : > { %1245 = vrot.lane.b32.xlu1 %v2742_v2, %s2432_s18 }
 0x21f   : > { %1422 = vrot.lane.b32.xlu0 %v1413_v4, %s2431_s17  ;;  %v2263_v4 = vld [vmem:[%s2928_s4 + $0x40] sm:$0xff] }
 0x220   : > { %1330 = vrot.lane.b32.xlu1 %v1233_v5, %s2433_s19  ;;  %v2062_v5 = vld [vmem:[%s2930_s6] sm:$0xff] }
 0x223   : > { %1420 = vrot.lane.b32.xlu0 %v2602_v30, %s2431_s17  ;;  %v1961_v30 = vmul.f32 %v2742_v2, %v2664_v53  ;;  %v2248_v53 = vld [vmem:[%s2928_s4 + $0x8] sm:$0xff] }
 0x224   : > { %1328 = vrot.lane.b32.xlu1 %v2593_v26, %s2433_s19  ;;  %v1775_v26 = vmul.f32 %v2740_v0, %v2619_v36  ;;  %v1242_v36 = vpop.permute.xlu0 %1241 }
 0x227   : > { %1518 = vrot.lane.b32.xlu0 %v1508_v17, %s2430_s13 }
 0x228   : > { %1424 = vrot.lane.b32.xlu1 %v1414_v6, %s2431_s17 }
 0x22b   : > { %1691 = vrot.lane.b32.xlu0 %v1682_v19, %s2429_s25 }
 0x22c   : > { %1516 = vrot.lane.b32.xlu1 %v1507_v21, %s2430_s13 }
 0x22f   : > { %1689 = vrot.lane.b32.xlu0 %v1681_v24, %s2429_s25 }
 0x230   : > { %1514 = vrot.lane.b32.xlu1 %v2624_v38, %s2430_s13  ;;  %s298_s13 = scalar_lea.vmem [#allocation4], %s2227_s12 }
 0x233   : > { %1787 = vrot.lane.b32.xlu0 %v2643_v48, %s2428_s22 }
 0x234   : > { %1693 = vrot.lane.b32.xlu1 %v2633_v43, %s2429_s25  ;;  %s2272_s25 = sshll.u32 %s2503_s9, 8 }
 0x235   : > { %s2882_s19 = scalar_lea.hbm %s2932_s8, %s2272_s25 }
 0x237   : > { %1876 = vrot.lane.b32.xlu0 %v2742_v2, %s2434_s24 }
 0x238   : > { %1785 = vrot.lane.b32.xlu1 %v1776_v18, %s2428_s22 }
 0x23b   : > { %1874 = vrot.lane.b32.xlu0 %v2740_v0, %s2434_s24 }
 0x23c   : > { %1783 = vrot.lane.b32.xlu1 %v1775_v26, %s2428_s22  ;;  %s2164_s22 = sshll.u32 %s298_s13, 4  ;;  %s2884_s22 = int_to_ptr.vmem [resolvable:$true] %s2164_s22 }
 0x23d   : > { %s2362_s9 = scalar_lea.vmem %s2884_s22, 256 }
 0x23e   : > { %p2363_p11 = scmp.ne.s32.totalorder %s2884_s22, %s2362_s9 }
 0x23f   : > { %1972 = vrot.lane.b32.xlu0 %v2666_v54, %s2427_s21 }
 0x240   : > { %1878 = vrot.lane.b32.xlu1 %v2426_v1, %s2434_s24  ;;  %p2364_p12 = pnand %p2363_p11, %p2520_p5  ;;  %s2436_s24 = smov [#allocation4]  }
 0x241   : > { %s2366_s20 = sshll.u32 %s2436_s24, 4  ;;  %s2367_s20 = int_to_ptr.vmem [resolvable:$false] %s2366_s20 }
 0x242   : > { %p2365_p13 = pneg %p2364_p12  ;;  %s2368_s23 = scalar_lea.vmem %s2367_s20, 512 }
 0x243   : > { %2057 = vperm.xlu0 %2360, %v2054_v29   ;;  %p2369_p0 = scmp.lt.s32.totalorder %s2884_s22, %s2367_s20  ;;  %p2370_p1 = scmp.lt.s32.totalorder %s2368_s23, %s2362_s9 }
 0x244   : > { %1970 = vrot.lane.b32.xlu1 %v1961_v30, %s2427_s21 }
 0x245   : > { %p2371_p2 = por %p2370_p1, %p2369_p0 }
 0x247   : > { %p2372_p3 = pnand %p2371_p2, %p2365_p13 }
 0x248   : > { %1968 = vrot.lane.b32.xlu1 %v1960_v31, %s2427_s21  ;;  %s2150_s21 = scalar_lea.sflag [#allocation5], %s296_s10 }
 0x24c   : > { %2068 = vperm.xlu1 %2361, %v2065_v34  }
 0x28a   : > { %v1244_v38 = vpop.permute.xlu1 %1243 }
 0x28b   : > { %v1247_v51 = vsel %vm353_vm4, %v1242_v36, %v1244_v38 }
 0x28d   : > { %v1333_v43 = vpop.permute.xlu0 %1332 }
 0x28e   : > { %v1246_v46 = vpop.permute.xlu1 %1245 }
 0x28f   : > { %v1248_v48 = vsel %vm353_vm4, %v1244_v38, %v1246_v46 }
 0x290   : > { %1254 = vmatprep.subr.mxu1 %v1248_v48 }
 0x291   : > { %1255 = vmatpush1.msra.mxu1 %v1247_v51  ;;  %v1423_v54 = vpop.permute.xlu0 %1422 }
 0x292   : > { %2249 = vmatmul.mubr.msk.f32.vlgmr.msra.gmra.mrb[0].mxu1 %vm358_vm6, %v2248_v53  ;;  %v1331_v7 = vpop.permute.xlu1 %1330 }
 0x293   : > { %v1335_v8 = vsel %vm442_vm7, %v1331_v7, %v1333_v43  ;;  %1405 = vmatprep.mubr.f32.mxu1 %v2426_v1 }
 0x294   : > { %1341 = vmatprep.subr.mxu1 %v1335_v8 }
 0x295   : > { %v1421_v16 = vpop.permute.xlu0 %1420 }
 0x296   : > { %v1329_v9 = vpop.permute.xlu1 %1328  ;;  %v1426_v23 = vsel %vm553_vm5, %v1421_v16, %v1423_v54 }
 0x297   : > { %v1334_v10 = vsel %vm442_vm7, %v1329_v9, %v1331_v7 }
 0x298   : > { %1342 = vmatpush1.msra.mxu1 %v1334_v10 }
 0x299   : > { %v1519_v25 = vpop.permute.xlu0 %1518 }
 0x29a   : > { %v1425_v20 = vpop.permute.xlu1 %1424  ;;  %2250 = vmatmul.mubr.msk.f32.vlgmr.msra.gmra.mrb[0].mxu1 %vm358_vm6, %v1235_v15 }
 0x29b   : > { %v1427_v22 = vsel %vm553_vm5, %v1423_v54, %v1425_v20  ;;  %1497 = vmatprep.mubr.f32.mxu1 %v2426_v1 }
 0x29c   : > { %1433 = vmatprep.subr.mxu1 %v1427_v22 }
 0x29d   : > { %1434 = vmatpush1.msra.mxu1 %v1426_v23  ;;  %v1692_v35 = vpop.permute.xlu0 %1691 }
 0x29e   : > { %v1517_v27 = vpop.permute.xlu1 %1516 }
 0x29f   : > { %v1521_v28 = vsel %vm657_vm3, %v1517_v27, %v1519_v25 }
 0x2a0   : > { %1527 = vmatprep.subr.mxu1 %v1521_v28 }
 0x2a1   : > { %v1690_v39 = vpop.permute.xlu0 %1689 }
 0x2a2   : > { %v1515_v14 = vpop.permute.xlu1 %1514  ;;  %2252 = vmatmul.mubr.msk.f32.vlgmr.msra.gmra.mrb[0].mxu1 %vm358_vm6, %v2251_v32  ;;  %v1695_v45 = vsel %vm638_vm2, %v1690_v39, %v1692_v35 }
 0x2a3   : > { %v1520_v33 = vsel %vm657_vm3, %v1515_v14, %v1517_v27  ;;  %1591 = vmatprep.mubr.f32.mxu1 %v2426_v1 }
 0x2a4   : > { %1528 = vmatpush1.msra.mxu1 %v1520_v33 }
 0x2a5   : > { %1605 = vmatprep.subr.mxu1 %v2742_v2  ;;  %v1788_v44 = vpop.permute.xlu0 %1787  ;;  %v2261_v2 = vld [vmem:[%s2928_s4 + $0x38] sm:$0xff] }
 0x2a6   : > { %v1694_v37 = vpop.permute.xlu1 %1693 }
 0x2a7   : > { %v1696_v40 = vsel %vm638_vm2, %v1692_v35, %v1694_v37 }
 0x2a9   : > { %v1877_v50 = vpop.permute.xlu0 %1876 }
 0x2aa   : > { %2254 = vmatmul.mubr.msk.f32.vlgmr.msra.gmra.mrb[0].mxu1 %vm358_vm6, %v2253_v13  ;;  %v1786_v41 = vpop.permute.xlu1 %1785 }
 0x2ab   : > { %1606 = vmatpush1.msra.mxu1 %v2740_v0  ;;  %1669 = vmatprep.mubr.f32.mxu1 %v2426_v1  ;;  %v1790_v49 = vsel %vm534_vm1, %v1786_v41, %v1788_v44 }
 0x2ac   : > { %1702 = vmatprep.subr.mxu1 %v1696_v40 }
 0x2ad   : > { %v1875_v58 = vpop.permute.xlu0 %1874 }
 0x2ae   : > { %v1784_v47 = vpop.permute.xlu1 %1783  ;;  %v1880_v61 = vsel %vm1034_vm8, %v1875_v58, %v1877_v50 }
 0x2af   : > { %v1789_v56 = vsel %vm534_vm1, %v1784_v47, %v1786_v41 }
 0x2b1   : > { %v1973_v62 = vpop.permute.xlu0 %1972 }
 0x2b2   : > { %2256 = vmatmul.mubr.msk.f32.vlgmr.msra.gmra.mrb[0].mxu1 %vm358_vm6, %v2255_v42  ;;  %v1879_v55 = vpop.permute.xlu1 %1878 }
 0x2b3   : > { %1703 = vmatpush1.msra.mxu1 %v1695_v45  ;;  %1766 = vmatprep.mubr.f32.mxu1 %v2426_v1  ;;  %v1881_v57 = vsel %vm1034_vm8, %v1877_v50, %v1879_v55 }
 0x2b4   : > { %1796 = vmatprep.subr.mxu1 %v1790_v49 }
 0x2b6   : > { %v1971_v60 = vpop.permute.xlu1 %1970 }
 0x2b7   : > { %v1975_v63 = vsel %vm333_vm0, %v1971_v60, %v1973_v62 }
 0x2ba   : > { %2258 = vmatmul.mubr.msk.f32.vlgmr.msra.gmra.mrb[0].mxu1 %vm358_vm6, %v2257_v52  ;;  %v1969_v0 = vpop.permute.xlu1 %1968 }
 0x2bb   : > { %1797 = vmatpush1.msra.mxu1 %v1789_v56  ;;  %1860 = vmatprep.mubr.f32.mxu1 %v2426_v1  ;;  %v1974_v3 = vsel %vm333_vm0, %v1969_v0, %v1971_v60 }
 0x2bc   : > { %1887 = vmatprep.subr.mxu1 %v1881_v57 }
 0x2c2   : > { %2260 = vmatmul.mubr.msk.f32.vlgmr.msra.gmra.mrb[0].mxu1 %vm358_vm6, %v2259_v59 }
 0x2c3   : > { %1888 = vmatpush1.msra.mxu1 %v1880_v61  ;;  %1951 = vmatprep.mubr.f32.mxu1 %v2426_v1 }
 0x2c4   : > { %1981 = vmatprep.subr.mxu1 %v1975_v63 }
 0x2ca   : > { %2262 = vmatmul.mubr.msk.f32.vlgmr.msra.gmra.mrb[0].mxu1 %vm358_vm6, %v2261_v2 }
 0x2cb   : > { %1982 = vmatpush1.msra.mxu1 %v1974_v3  ;;  %2045 = vmatprep.mubr.f32.mxu1 %v2426_v1  ;;  %v2069_v17 = vpop.permute.xlu1 %2068 }
 0x2cc   : > { %2074 = vmatprep.subr.mxu1 %v2553_v12  ;;  %v2058_v12 = vpop.permute.xlu0 %2057 }
 0x2cd   : > { %v2273_v6 = vadd.f32 %v2069_v17, %v2058_v12 }
 0x2d2   : > { %2264 = vmatmul.mubr.msk.f32.vlgmr.msra.gmra.mrb[0].mxu1 %vm358_vm6, %v2263_v4 }
 0x2d3   : > { %2075 = vmatpush1.msra.mxu1 %v2551_v11  ;;  %2138 = vmatprep.mubr.f32.mxu1 %v2426_v1 }
 0x2da   : > { %2265 = vmatmul.mubr.msk.f32.vlgmr.msra.gmra.mrb[0].mxu1 %vm358_vm6, %v2062_v5 }
 0x3ad   : > { %v2140_v19 = vpop.f32.mrb[0].mxu1 }
 0x3ae   : > { %v2274_v21 = vadd.f32 %v2273_v6, %v2140_v19  ;;  %v2142_v11 = vpop.f32.mrb[1].mxu1 }
 0x3af   : > { %v2276_v24 = vadd.f32 %v2273_v6, %v2142_v11 }
 0x3b0   : > { %2147 = vst [vmem:[%s298_s13] sm:$0xff] %v2274_v21 }
 0x3b1   : > { %2148 = vst [vmem:[%s298_s13 + $0x8] sm:$0xff] %v2276_v24 }
 0x3b2   : > { %2375 = shalt.err (!%p2372_p3)
}
 0x3b3   : > { %s2376_s26 = scalar_lea.hbm %s2882_s19, 256  ;;  %s2380_s25 = scalar_lea.hbm %s2932_s8, 512 }
 0x3b4   : > { %p2377_p4 = scmp.ne.s32.totalorder %s2882_s19, %s2376_s26  ;;  %p2381_p9 = scmp.lt.u32.totalorder %s2882_s19, %s2932_s8 }
 0x3b5   : > { %p2382_p10 = scmp.lt.u32.totalorder %s2380_s25, %s2376_s26  ;;  %p2384_p12 = scmp.lt.u32.totalorder %s2376_s26, %s2882_s19 }
 0x3b6   : > { %p2378_p7 = pnand %p2377_p4, %p2520_p5 }
 0x3b7   : > { %p2383_p11 = por %p2382_p10, %p2381_p9 }
 0x3b8   : > { %p2379_p8 = pneg %p2378_p7 }
 0x3b9   : > { %p2385_p13 = por %p2384_p12, %p2383_p11 }
 0x3bb   : > { %p2386_p0 = pnand %p2385_p13, %p2379_p8 }
 0x3bd   : > { %2389 = shalt.err (!%p2386_p0)
}
 0x3be   : > { %2311 = dma.vmem_to_hbm [thread:$0]  (%p2520_p5), %s2884_s22, 256, %s2882_s19, %s2150_s21  }
 0x3bf PF: > { %p2317_p1 = scmp.ge.s32.totalorder %s2424_s30, 2  ;;  %s2176_s18 = sand.u32 1, %s2412_s27  }
 0x3c0   : > { %s2177_s9 = scalar_lea.sflag [#allocation5], %s2176_s18 }
 0x3c1   : > { %p2314_p2 = pnand %p2317_p1, %p2524_p6 }
 0x3c3   : > { %2407 = dma.done.wait (!%p2314_p2), %s2177_s9, 256  }
 0x3c4   : > { %2409 = vsyncadd (!%p2314_p2), %s2177_s9, 4294967040  ;;  %p18_p3 = scmp.ge.s32.totalorder %s2507_s11, 4   ;;  %s2935_s27 = smov %s2416_s28 }
 0x3c5   : > { %s2936_s28 = smov %s2420_s29  ;;  %s2937_s29 = smov %s2518_s14 }
 0x3c6   : > { %s2938_s30 = smov %s2507_s11  ;;  %20 = sbr.rel (!%p18_p3) target bundleno = 3 (0x3), region = 104 }
 0x3cd   :  { %2182 = vsyncpa [#allocation5], 1 }
 0x3ce   :  { %2184 = vsyncpa [#allocation5 + $0x1], 1 }

</bundles_post_ra>
